<compile_context>
chip_gen: v5e
topology: v5e:2x2
jax: 0.10.0
libtpu: 0.0.40
codegen_flags: <defaults>
</compile_context>

<pallas_src>
import math

import jax
import jax.numpy as jnp
from jax import lax
from jax.experimental import pallas as pl
from jax.experimental.pallas import tpu as pltpu


def _qkv_proj_kernel(x_ref, w_ref, b_ref, out_ref):
    """Fused QKV projection for one (batch, row-tile) block.

    x_ref:   (rt, D)    bf16
    w_ref:   (D, 3D)    bf16   fused [Wq*scale | Wk | Wv], stored so y = x @ W
    b_ref:   (1, 3D)    f32    fused [bq*scale | bk | bv]
    out_ref: (rt, 3D)   bf16
    """
    y = jnp.dot(x_ref[...], w_ref[...],
                preferred_element_type=jnp.float32) + b_ref[0]
    out_ref[...] = y.astype(out_ref.dtype)


def _attn_kernel(q_ref, k_ref, v_ref, bias_ref, wo_ref, bo_ref, out_ref):
    """One grid step == (batch element b, query tile qt, head h).

    q_ref:    (tq, hd)    bf16   this head's pre-scaled query tile
    k_ref:    (H, S, hd)  bf16   all heads' keys for batch b (resident per b)
    v_ref:    (H, S, hd)  bf16   all heads' values for batch b (resident per b)
    bias_ref: (1, S)      f32    additive mask bias: 0 = attend, -inf = masked
    wo_ref:   (hd, D)     bf16   output-projection rows for head h
    bo_ref:   (1, D)      f32
    out_ref:  (tq, D)     f32    resident accumulator across the head axis
    """
    h = pl.program_id(2)
    last_h = pl.num_programs(2) - 1

    qh = q_ref[...]                     # (tq, hd)  (scale already folded in)
    kh = k_ref[h]                       # (S, hd)   leading-index read
    vh = v_ref[h]                       # (S, hd)

    # scores = q @ k^T without materializing a transpose (contract head dim).
    s = lax.dot_general(qh, kh, (((1,), (1,)), ((), ())),
                        preferred_element_type=jnp.float32)       # (tq, S)
    s = s + bias_ref[...]               # (1, S) broadcasts over query rows

    # softmax along keys in f32, normalization deferred until after PV.
    m = jnp.max(s, axis=-1, keepdims=True)
    e = jnp.exp(s - m)
    l = jnp.sum(e, axis=-1, keepdims=True)

    ctx = jnp.dot(e.astype(vh.dtype), vh,
                  preferred_element_type=jnp.float32)             # (tq, hd)
    ctx = ctx * pl.reciprocal(l, approx=True)                     # post-PV norm

    # per-head slice of the output projection, accumulated into the resident
    # f32 output block (no context slab, no partial-lane stores).
    part = jnp.dot(ctx.astype(wo_ref.dtype), wo_ref[...],
                   preferred_element_type=jnp.float32)            # (tq, D)

    @pl.when(h == 0)
    def _():
        out_ref[...] = jnp.zeros_like(out_ref)

    out_ref[...] += part

    @pl.when(h == last_h)
    def _():
        out_ref[...] += bo_ref[0]


def multi_head_self_attention(x, mask, params, *, n_heads, q_tile=None):
    """DistilBERT MultiHeadSelfAttention forward (self-attention: q = k = v = x).

    x:    (B, S, D) float32
    mask: (B, S)    float32, nonzero = attend, 0 = masked
    params: dict with wq, bq, wk, bk, wv, bv, wo, bo; weights stored transposed
            (y = x @ W + b), shapes (D, D); biases (1, D).
    Returns context: (B, S, D) float32
    """
    B, S, D = x.shape
    assert D % n_heads == 0
    hd = D // n_heads

    if q_tile is None:
        q_tile = min(S, 128)
    assert S % q_tile == 0
    nqt = S // q_tile

    scale = 1.0 / math.sqrt(hd)

    # Fold the softmax scale into Wq / bq (host side, zero in-kernel cost).
    wqkv = jnp.concatenate(
        [params["wq"] * scale, params["wk"], params["wv"]],
        axis=1).astype(jnp.bfloat16)
    bqkv = jnp.concatenate(
        [params["bq"] * scale, params["bk"], params["bv"]],
        axis=1).astype(jnp.float32)

    x_bf = x.astype(jnp.bfloat16)

    # ---- kernel 1: fused QKV projection -> (B, S, 3D) bf16 ----------------
    rt = q_tile
    qkv = pl.pallas_call(
        _qkv_proj_kernel,
        out_shape=jax.ShapeDtypeStruct((B, S, 3 * D), jnp.bfloat16),
        grid=(B, S // rt),
        in_specs=[
            pl.BlockSpec((None, rt, D), lambda b, r: (b, r, 0)),      # x tile
            pl.BlockSpec((D, 3 * D), lambda b, r: (0, 0)),            # Wqkv
            pl.BlockSpec((1, 3 * D), lambda b, r: (0, 0)),            # bqkv
        ],
        out_specs=pl.BlockSpec((None, rt, 3 * D), lambda b, r: (b, r, 0)),
        compiler_params=pltpu.CompilerParams(
            dimension_semantics=("parallel", "parallel"),
            vmem_limit_bytes=32 * 1024 * 1024),
    )(x_bf, wqkv, bqkv)

    # head-major split: (B, S, 3D) -> (3, B, H, S, hd); cheap XLA relayout.
    qkv = qkv.reshape(B, S, 3, n_heads, hd).transpose(2, 0, 3, 1, 4)
    q, k, v = qkv[0], qkv[1], qkv[2]          # each (B, H, S, hd) bf16

    # Additive mask bias precomputed on the host: 0 attend / -inf masked.
    bias = jnp.where(mask.reshape(B, 1, S) == 0.0,
                     jnp.float32(-jnp.inf), jnp.float32(0.0))

    # Output projection stored head-major: Wo rows split per head.
    wo_h = params["wo"].reshape(n_heads, hd, D).astype(jnp.bfloat16)
    bo = params["bo"].astype(jnp.float32)

    # ---- kernel 2: attention + per-head output projection ------------------
    out = pl.pallas_call(
        _attn_kernel,
        out_shape=jax.ShapeDtypeStruct((B, S, D), jnp.float32),
        grid=(B, nqt, n_heads),
        in_specs=[
            pl.BlockSpec((None, None, q_tile, hd),
                         lambda b, qt, h: (b, h, qt, 0)),             # q (this head)
            pl.BlockSpec((None, n_heads, S, hd),
                         lambda b, qt, h: (b, 0, 0, 0)),              # k (all heads)
            pl.BlockSpec((None, n_heads, S, hd),
                         lambda b, qt, h: (b, 0, 0, 0)),              # v (all heads)
            pl.BlockSpec((None, 1, S),
                         lambda b, qt, h: (b, 0, 0)),                 # mask bias
            pl.BlockSpec((None, hd, D),
                         lambda b, qt, h: (h, 0, 0)),                 # Wo head h
            pl.BlockSpec((1, D),
                         lambda b, qt, h: (0, 0)),                    # bo
        ],
        out_specs=pl.BlockSpec((None, q_tile, D),
                               lambda b, qt, h: (b, qt, 0)),
        compiler_params=pltpu.CompilerParams(
            dimension_semantics=("parallel", "parallel", "arbitrary"),
            vmem_limit_bytes=32 * 1024 * 1024),
    )(q, k, v, bias, wo_h, bo)

    return out


def _reference(x, mask, params, *, n_heads):
    """Pure-JAX f32 reference mirroring the PyTorch forward (eval, q=k=v=x)."""
    B, S, D = x.shape
    hd = D // n_heads

    def lin(t, w, b):
        return t @ w + b[0]

    def split(t):  # (B, S, D) -> (B, H, S, hd)
        return t.reshape(B, S, n_heads, hd).transpose(0, 2, 1, 3)

    q = split(lin(x, params["wq"], params["bq"])) / math.sqrt(hd)
    k = split(lin(x, params["wk"], params["bk"]))
    v = split(lin(x, params["wv"], params["bv"]))

    scores = jnp.einsum("bhqd,bhkd->bhqk", q, k)
    m = (mask == 0).reshape(B, 1, 1, S)
    scores = jnp.where(m, -jnp.inf, scores)
    weights = jax.nn.softmax(scores, axis=-1)
    ctx = jnp.einsum("bhqk,bhkd->bhqd", weights, v)
    ctx = ctx.transpose(0, 2, 1, 3).reshape(B, S, D)
    return lin(ctx, params["wo"], params["bo"])


def _init_params(key, dim):
    """Deterministic xavier-uniform-ish weights (stored transposed), nonzero bias."""
    keys = jax.random.split(key, 4)
    limit = math.sqrt(6.0 / (dim + dim))

    def make(k):
        w = jax.random.uniform(k, (dim, dim), jnp.float32, -limit, limit)
        return w.T, jnp.zeros((1, dim), jnp.float32)   # transposed: y = x @ W + b

    (wq, bq), (wk, bk), (wv, bv), (wo, bo) = [make(k) for k in keys]
    bq = bq + 0.01
    bk = bk - 0.02
    bv = bv + 0.03
    bo = bo - 0.04
    return dict(wq=wq, bq=bq, wk=wk, bk=bk, wv=wv, bv=bv, wo=wo, bo=bo)


if __name__ == "__main__":
    B, S, D, H = 2, 8, 32, 4   # bs=2, seq=8, dim=32, n_heads=4

    root = jax.random.PRNGKey(0)
    kx, kp = jax.random.split(root, 2)

    x = jax.random.normal(kx, (B, S, D), jnp.float32)

    # attention mask: 1 = attend, 0 = masked (pad the tail of batch 1)
    mask = jnp.ones((B, S), jnp.float32)
    mask = mask.at[1, -2:].set(0.0)

    params = _init_params(kp, D)

    out = multi_head_self_attention(x, mask, params, n_heads=H)
    out = jax.block_until_ready(out)

    ref = _reference(x, mask, params, n_heads=H)
    assert out.shape == (B, S, D)
    # Kernel runs matmuls with bf16 operands (+ approx EUP reciprocal in the
    # softmax); compare against the pure-f32 reference with bf16-level tolerance.
    assert jnp.allclose(out, ref, atol=5e-2, rtol=5e-2), "mismatch vs JAX reference"

    print("KERNEL_OK")
</pallas_src>

<mosaic_0001>
module attributes {stable_mosaic.version = 11 : i64} {
  func.func @_qkv_proj_kernel(%arg0: i32, %arg1: i32, %arg2: memref<1x8x32xbf16, #tpu.memory_space<vmem>>, %arg3: memref<32x96xbf16, #tpu.memory_space<vmem>>, %arg4: memref<1x96xf32, #tpu.memory_space<vmem>>, %arg5: memref<1x8x96xbf16, #tpu.memory_space<vmem>>) attributes {dimension_semantics = [#tpu.dimension_semantics<parallel>, #tpu.dimension_semantics<parallel>], iteration_bounds = array<i64: 2, 1>, scalar_prefetch = 0 : i64, scratch_operands = 0 : i64, tpu.core_type = #tpu.core_type<tc>, window_params = [{transform_indices = @transform_0, window_bounds = array<i64: 1, 8, 32>}, {pipeline_mode = #tpu.pipeline_mode<synchronous>, transform_indices = @transform_1, window_bounds = array<i64: 32, 96>}, {pipeline_mode = #tpu.pipeline_mode<synchronous>, transform_indices = @transform_2, window_bounds = array<i64: 1, 96>}, {transform_indices = @transform_3, window_bounds = array<i64: 1, 8, 96>}]} {
    %c0 = arith.constant 0 : index
    %c0_0 = arith.constant 0 : index
    %c0_1 = arith.constant 0 : index
    %0 = vector.load %arg2[%c0, %c0_0, %c0_1] : memref<1x8x32xbf16, #tpu.memory_space<vmem>>, vector<1x8x32xbf16>
    %1 = vector.shape_cast %0 : vector<1x8x32xbf16> to vector<8x32xbf16>
    %c0_2 = arith.constant 0 : index
    %c0_3 = arith.constant 0 : index
    %2 = vector.load %arg3[%c0_2, %c0_3] : memref<32x96xbf16, #tpu.memory_space<vmem>>, vector<32x96xbf16>
    %cst = arith.constant dense<0.000000e+00> : vector<8x96xf32>
    %3 = tpu.matmul %1, %2, %cst {dimension_numbers = #tpu.dot_dimension_numbers<[1], [0], [0], [1], [0, 0, 1, 1], [], []>} : vector<8x32xbf16>, vector<32x96xbf16>, vector<8x96xf32> -> vector<8x96xf32>
    %c0_4 = arith.constant 0 : index
    %c0_5 = arith.constant 0 : index
    %4 = vector.load %arg4[%c0_4, %c0_5] : memref<1x96xf32, #tpu.memory_space<vmem>>, vector<1x96xf32>
    %5 = vector.shape_cast %4 : vector<1x96xf32> to vector<96xf32>
    %6 = vector.shape_cast %5 : vector<96xf32> to vector<1x96xf32>
    %7 = vector.broadcast %6 : vector<1x96xf32> to vector<8x96xf32>
    %8 = arith.addf %3, %7 : vector<8x96xf32>
    %9 = arith.truncf %8 : vector<8x96xf32> to vector<8x96xbf16>
    %c0_6 = arith.constant 0 : index
    %c0_7 = arith.constant 0 : index
    %c0_8 = arith.constant 0 : index
    %10 = vector.load %arg5[%c0_6, %c0_7, %c0_8] : memref<1x8x96xbf16, #tpu.memory_space<vmem>>, vector<1x8x96xbf16>
    %11 = vector.shape_cast %10 : vector<1x8x96xbf16> to vector<8x96xbf16>
    %12 = vector.shape_cast %9 : vector<8x96xbf16> to vector<1x8x96xbf16>
    tpu.vector_store %arg5[%c0_6, %c0_7, %c0_8], %12 {strides = array<i32>} : memref<1x8x96xbf16, #tpu.memory_space<vmem>>, vector<1x8x96xbf16>,
    return
  }
  func.func @transform_0(%arg0: i32, %arg1: i32) -> (i32, i32, i32) {
    %c0_i32 = arith.constant 0 : i32
    %c0_i32_0 = arith.constant 0 : i32
    return %arg0, %arg1, %c0_i32 : i32, i32, i32
  }
  func.func @transform_1(%arg0: i32, %arg1: i32) -> (i32, i32) {
    %c0_i32 = arith.constant 0 : i32
    %c0_i32_0 = arith.constant 0 : i32
    %c0_i32_1 = arith.constant 0 : i32
    return %c0_i32, %c0_i32_0 : i32, i32
  }
  func.func @transform_2(%arg0: i32, %arg1: i32) -> (i32, i32) {
    %c0_i32 = arith.constant 0 : i32
    %c0_i32_0 = arith.constant 0 : i32
    %c0_i32_1 = arith.constant 0 : i32
    return %c0_i32, %c0_i32_0 : i32, i32
  }
  func.func @transform_3(%arg0: i32, %arg1: i32) -> (i32, i32, i32) {
    %c0_i32 = arith.constant 0 : i32
    %c0_i32_0 = arith.constant 0 : i32
    return %arg0, %arg1, %c0_i32 : i32, i32, i32
  }
}

</mosaic_0001>

<bundles_post_ra>
// kernel: tpu_custom_call.1
= control target key start
LH: loop header
LB: loop body
LE: loop exit
PB: predicated region body
PF: predicated region fallthrough
CT: control target
= control target key end

     0   :  { %8 = vsyncpa [#allocation3], 0  ;;  %s790_s0 = inlined_call_operand.hbm [shape: bf16[2,8,32], index: 0, kind: input, shape index: {}]   ;;  %s791_s1 = inlined_call_operand.hbm [shape: bf16[32,96], index: 1, kind: input, shape index: {}]   ;;  %s792_s2 = inlined_call_operand.vmem [shape: f32[1,96], index: 2, kind: input, shape index: {}]   ;;  %s793_s3 = inlined_call_operand.hbm [shape: bf16[2,8,96], index: 3, kind: output, shape index: {}]  }
   0x1   :  { %10 = vsyncpa [#allocation3 + $0x1], 0 }
   0x2   :  { %11 = vsyncpa [#allocation6], 0 }
   0x3   :  { %12 = vsyncpa [#allocation4], 0 }
   0x4   :  { %14 = vsyncpa [#allocation4 + $0x1], 0  ;;  %s644_s12 = smov 0   ;;  %s646_s13 = smov 0  }
   0x5   :  { %s648_s14 = smov 0   ;;  %s650_s15 = smov 0  }
   0x6   :  { %s652_s16 = smov 0   ;;  %s654_s17 = smov 0  }
   0x7 LB: > { %s371_s18 = sadd.s32 4294967295, %s619_s17   ;;  %p373_p0 = scmp.ge.s32.totalorder %s619_s17, 1  ;;  %s619_s17 = sphi %s654_s17, %s20_s17   ;;  %s615_s16 = sphi %s652_s16, %s804_s16   ;;  %s611_s15 = sphi %s650_s15, %s803_s15   ;;  %s607_s14 = sphi %s648_s14, %s802_s14   ;;  %s603_s13 = sphi %s646_s13, %s801_s13   ;;  %s599_s12 = sphi %s644_s12, %s800_s12  }
   0x8   : > { %p676_p1 = scmp.eq.s32.totalorder %s371_s18, 0  ;;  %p135_p2 = scmp.lt.s32.totalorder %s619_s17, 3 }
   0x9   : > { %s146_s22 = sshll.u32 %s791_s1, 4  ;;  %s621_s24 = smov [#allocation5]   ;;  %s147_s22 = int_to_ptr.hbm [resolvable:$true] %s146_s22 }
   0xa   : > { %p684_p3 = pnand %p373_p0, %p135_p2  ;;  %s148_s25 = sshll.u32 %s621_s24, 4  ;;  %s149_s25 = int_to_ptr.vmem [resolvable:$true] %s148_s25 }
   0xb   : > { %p375_p6 = scmp.ge.s32.totalorder %s619_s17, 2  ;;  %s622_s26 = smov 64  }
   0xc   : > { %p405_p4 = pneg %p684_p3  ;;  %s623_s27 = smov 4  }
   0xd   : > { %s372_s28 = sadd.s32 4294967294, %s619_s17   ;;  %s32_s29 = sadd.s32 1, %s615_s16 }
   0xe   : > { %p406_p5 = pnand %p405_p4, %p676_p1  ;;  %s41_s30 = sadd.s32 1, %s607_s14 }
   0xf   : > { %p34_p7 = scmp.ge.s32.totalorder %s32_s29, 2  ;;  %p48_p8 = scmp.ne.s32.totalorder %s607_s14, %s603_s13 }
  0x10   : > { %408 = dma.hbm_to_vmem [thread:$0]  (!%p406_p5), %s147_s22, 256, %s149_s25, [#allocation6], %s622_s26, %s622_s26, %s623_s27  }
  0x11   : > { %p49_p9 = scmp.eq.s32.totalorder %s619_s17, 0  ;;  %p54_p10 = scmp.ne.s32.totalorder %s603_s13, %s599_s12 }
  0x12   : > { %s806_s29 = smov (%p34_p7, %s32_s29), 0  ;;  %p122_p13 = scmp.eq.s32.totalorder %s371_s18, 1 }
  0x13   : > { %p703_p11 = por %p49_p9, %p48_p8  ;;  %p709_p12 = por %p676_p1, %p54_p10 }
  0x14   : > { %s36_s6 = ssub.s32 %s615_s16, %s806_s29  ;;  %p128_p2 = scmp.eq.s32.totalorder %s372_s28, 1 }
  0x15   : > { %p39_p0 = scmp.eq.s32.totalorder %s36_s6, 0  ;;  %p715_p4 = por %p122_p13, %p48_p8 }
  0x16   : > { %p418_p5 = scmp.lt.s32.totalorder %s619_s17, 2  ;;  %p723_p7 = por %p128_p2, %p54_p10 }
  0x17   : > { %s721_s8 = scalar_select %p39_p0, %s607_s14, %s41_s30  }
  0x18   : > { %s165_s10 = sand.u32 1, %s607_s14   ;;  %s377_s20 = sshll.u32 %s615_s16, 2 }
  0x19   : > { %s376_s11 = sshll.u32 %s165_s10, 2  ;;  %s174_s18 = scalar_lea.hbm %s790_s0, %s377_s20 }
  0x1a   : > { %s169_s24 = scalar_lea.vmem [#allocation2], %s376_s11  ;;  %s176_s26 = sshll.u32 %s174_s18, 4  ;;  %s177_s26 = int_to_ptr.hbm [resolvable:$true] %s176_s26 }
  0x1b   : > { %s178_s25 = sshll.u32 %s169_s24, 4  ;;  %p410_p8 = pnand %p418_p5, %p703_p11  ;;  %s179_s25 = int_to_ptr.vmem [resolvable:$true] %s178_s25 }
  0x1c   : > { %s166_s27 = scalar_lea.sflag [#allocation3], %s165_s10  ;;  %187 = sbr.rel (%p684_p3) target bundleno = 178 (0xb2), region = 32 }
  0x1d   : > { %412 = dma.hbm_to_vmem [thread:$0]  (!%p410_p8), %s177_s26, 64, %s179_s25, %s166_s27  }
  0x1e   : > { %s737_s28 = sand.u32 (!%p684_p3), 1, %s603_s13  }
  0x1f   : > { %s379_s30 = sshll.u32 (!%p684_p3), %s737_s28, 2  ;;  %s190_s6 = scalar_lea.sflag (!%p684_p3), [#allocation3], %s737_s28 }
  0x20   : > { %s193_s11 = scalar_lea.vmem (!%p684_p3), [#allocation2], %s379_s30 }
  0x21   : > { %586 = dma.done.wait (%p709_p12), %s190_s6, 64  }
  0x22   : > { %588 = vsyncadd (%p709_p12), %s190_s6, 4294967232 }
  0x23   : > { %590 = dma.done.wait (%p676_p1), [#allocation6], 256  }
  0x24   : > { %592 = vsyncadd (%p676_p1), [#allocation6], 4294967040  ;;  %v396_v0 = vld [vmem:[#allocation5 + $0x8] sm:$0xff]  ;;  %v395_v1 = vld [vmem:[#allocation5] sm:$0xff]  ;;  %vm244_vm0 = vcmask 261120   ;;  %s392_s23 = sshll.u32 %s611_s15, 2 }
  0x25   : > { %254 = vmatpush.bf16.msra.mxu0 %v396_v0  ;;  %v223_v2 = vld [vmem:[%s193_s11] sm:$0xf]  ;;  %s276_s21 = scalar_lea.hbm %s793_s3, %s392_s23  ;;  %s221_s19 = scalar_lea.vmem [#allocation7], %s379_s30  ;;  %vm262_vm1 = vcmask 781312  }
  0x26   : > { %v472_v3 = vld [vmem:[%s792_s2] ss:$0 sm:$0xff]  ;;  %s278_s22 = sshll.u32 %s221_s19, 4  ;;  %s280_s18 = sshll.u32 %s276_s21, 4  ;;  %s279_s22 = int_to_ptr.vmem [resolvable:$true] %s278_s22  ;;  %s281_s18 = int_to_ptr.hbm [resolvable:$true] %s280_s18 }
  0x27   : > { %s265_s15 = scalar_lea.sflag [#allocation4], %s737_s28  ;;  %s547_s24 = sshra.s32 %s281_s18, 4  ;;  %s548_s24 = int_to_ptr.hbm [resolvable:$true] %s547_s24 }
  0x28   : > { %s549_s25 = scalar_lea.hbm %s548_s24, 4  ;;  %s553_s30 = scalar_lea.hbm %s793_s3, 8 }
  0x29   : > { %255 = vmatpush.bf16.msra.mxu0 %v395_v1  ;;  %p550_p1 = scmp.ne.s32.totalorder %s548_s24, %s549_s25  ;;  %p554_p10 = scmp.lt.s32.totalorder %s548_s24, %s793_s3 }
  0x2a   : > { %p555_p11 = scmp.lt.s32.totalorder %s553_s30, %s549_s25 }
  0x2b   : > { %p551_p3 = pnand %p550_p1, %p715_p4 }
  0x2c   : > { %390 = vmatmul.msk.bf16.vlgmr.msra.gmra.mxu0 %vm244_vm0, %v223_v2  ;;  %p556_p12 = por %p555_p11, %p554_p10 }
  0x2d   : > { %p552_p9 = pneg %p551_p3 }
  0x2f   : > { %p557_p13 = pnand %p556_p12, %p552_p9 }
  0xa9   : > { %v257_v4 = vpop.f32.mrf.mxu0 }
  0xaa   : > { %v258_v5 = vadd.f32 %v472_v3, %v257_v4 }
  0xac   : > { %v261_v6 = vpack.c.bf16 %v258_v5, %v258_v5 }
  0xae   : > { %263 = vst.msk [vmem:[%s221_s19] sm:$0xf] %vm262_vm1, %v261_v6 }
  0xaf   : > { %560 = shalt.err (!%p557_p13)
}
  0xb0   : > { %403 = dma.vmem_to_hbm [thread:$0]  (%p715_p4), %s279_s22, 64, %s281_s18, %s265_s15  }
  0xb1   : > { %v259_v7 = vpop.f32.mrf.mxu0 }
  0xb2 PF: > { %s292_s28 = sand.u32 1, %s599_s12   ;;  %p414_p0 = pnand %p375_p6, %p723_p7 }
  0xb3   : > { %s293_s23 = scalar_lea.sflag [#allocation4], %s292_s28 }
  0xb4   : > { %p415_p2 = pneg %p414_p0 }
  0xb6   : > { %594 = dma.done.wait (%p415_p2), %s293_s23, 64  }
  0xb7   : > { %596 = vsyncadd (%p415_p2), %s293_s23, 4294967232  ;;  %s20_s17 = sadd.s32 1, %s619_s17   ;;  %s800_s12 = smov %s603_s13 }
  0xb8   : > { %p17_p5 = scmp.ge.s32.totalorder %s20_s17, 4   ;;  %s801_s13 = smov %s607_s14 }
  0xb9   : > { %s802_s14 = smov %s721_s8  ;;  %s803_s15 = smov %s615_s16 }
  0xba   : > { %s804_s16 = smov %s806_s29  ;;  %19 = sbr.rel (!%p17_p5) target bundleno = 7 (0x7), region = 81 }
  0xbf   :  { %299 = vsyncpa [#allocation3], 1 }
  0xc0   :  { %301 = vsyncpa [#allocation3 + $0x1], 1 }
  0xc1   :  { %302 = vsyncpa [#allocation6], 1 }
  0xc2   :  { %303 = vsyncpa [#allocation4], 1 }
  0xc3   :  { %305 = vsyncpa [#allocation4 + $0x1], 1 }

</bundles_post_ra>
